<compile_context>
chip_gen: v7x
topology: tpu7x:2x2x1
jax: 0.10.0
libtpu: 0.0.40
codegen_flags: <defaults>
</compile_context>

<pallas_src>
import functools

import jax
import jax.numpy as jnp
from jax.experimental import pallas as pl
from jax.experimental.pallas import tpu as pltpu

LANE = 128
SUBLANE = 8


def _round_up(x, m):
    return ((x + m - 1) // m) * m


def _fused_mlp_kernel(*refs, n_layers):
    # refs = (x_ref, w0_ref, b0_ref, ..., w{L-1}_ref, b{L-1}_ref, o_ref)
    x_ref = refs[0]
    o_ref = refs[-1]
    h = x_ref[...]  # keep input dtype; cast per-dot to the weight dtype below
    for li in range(n_layers):
        w_ref = refs[1 + 2 * li]
        b_ref = refs[2 + 2 * li]
        # MXU matmul in the weights' dtype (bf16 on v6e/v7x), f32 accumulation.
        h = jnp.dot(h.astype(w_ref.dtype), w_ref[...],
                    preferred_element_type=jnp.float32)
        # TODO(synk): training-mode dropout (p>0) would fuse here, before the ReLU.
        if li < n_layers - 1:
            # bias + ReLU fused in one f32 elementwise pass (no extra store pass).
            h = jnp.maximum(h + b_ref[...], 0.0)
        else:
            h = h + b_ref[...]
    o_ref[...] = h.astype(o_ref.dtype)


def prepare_params(params, compute_dtype=jnp.float32):
    """Pad + cast weights ONCE (cache the result; do not rebuild every forward).

    params: list of (w:(Din,Dout), b:(Dout,)) -- torch.nn.Linear weights transposed.
    Hidden widths are padded to multiples of 128 (lane-dense); the first layer's
    input dim and the last layer's output dim stay at their true sizes so the
    kernel's x / out blocks need no host-side pad or slice. Biases stay f32.
    """
    n = len(params)
    prepared = []
    prev_pad = params[0][0].shape[0]  # true in_features (matches the x block)
    for li, (w, b) in enumerate(params):
        d_in, d_out = w.shape
        out_pad = d_out if li == n - 1 else _round_up(d_out, LANE)
        wp = (jnp.zeros((prev_pad, out_pad), compute_dtype)
              .at[:d_in, :d_out].set(w.astype(compute_dtype)))
        bp = (jnp.zeros((1, out_pad), jnp.float32)
              .at[0, :d_out].set(b.astype(jnp.float32)))
        prepared.append((wp, bp))
        prev_pad = out_pad
    return prepared


def mlp_forward(prepared, x, *, block_b=2048, weight_vmem_budget=48 * 2**20):
    """Fused MLP forward. prepared: output of prepare_params. x: (B, in_features)."""
    B, Din = x.shape
    n_layers = len(prepared)
    assert prepared[0][0].shape[0] == Din, "x feature dim must match prepared params"
    pdims = [Din] + [w.shape[1] for (w, _) in prepared]
    out_features = pdims[-1]

    # ---- batch tiling: no host-side padding; Pallas masks the ragged last tile.
    TB = min(block_b, _round_up(B, SUBLANE))
    if B >= 2 * SUBLANE and pl.cdiv(B, TB) < 2:
        # >= 2 grid steps so the "parallel" batch axis can use both v7x TensorCores.
        TB = min(block_b, _round_up(pl.cdiv(B, 2), SUBLANE))
    grid = (pl.cdiv(B, TB),)

    # ---- VMEM accounting (each TC holds its own weight copy; assume 2x buffering
    # for the constant-index weight blocks unless single-buffered explicitly).
    w_bytes = sum(w.size * w.dtype.itemsize + b.size * b.dtype.itemsize
                  for (w, b) in prepared)
    if 2 * w_bytes > weight_vmem_budget:
        # TODO(synk): switch to the K/N-tiled fallback instead of failing.
        raise NotImplementedError(
            f"resident weights ({2 * w_bytes} B) exceed the per-TC VMEM budget "
            f"({weight_vmem_budget} B); a K/N-tiled accumulator kernel is required.")
    io_bytes = 2 * TB * (pdims[0] + out_features) * x.dtype.itemsize  # x/out, 2-buffered
    act_bytes = 2 * TB * max(pdims) * 4                               # in-kernel f32 h temps
    vmem_limit = int(1.25 * (2 * w_bytes + io_bytes + act_bytes))
    vmem_limit = max(16 * 2**20, min(vmem_limit, 100 * 2**20))

    args = [x]
    in_specs = [pl.BlockSpec((TB, Din), lambda i: (i, 0))]
    flops = 0
    bytes_accessed = x.size * x.dtype.itemsize + B * out_features * x.dtype.itemsize
    for (w, b) in prepared:
        args += [w, b]
        # Whole-weight blocks with a constant index map -> stay VMEM resident across
        # all grid steps (single-buffering them via pipeline_mode=pl.Buffered(1) is a
        # further VMEM-headroom option for very wide MLPs).
        in_specs += [
            pl.BlockSpec(w.shape, lambda i: (0, 0)),
            pl.BlockSpec(b.shape, lambda i: (0, 0)),
        ]
        flops += 2 * B * w.shape[0] * w.shape[1]
        bytes_accessed += w.size * w.dtype.itemsize + b.size * b.dtype.itemsize

    out = pl.pallas_call(
        functools.partial(_fused_mlp_kernel, n_layers=n_layers),
        out_shape=jax.ShapeDtypeStruct((B, out_features), x.dtype),
        grid_spec=pl.GridSpec(
            grid=grid,
            in_specs=in_specs,
            out_specs=pl.BlockSpec((TB, out_features), lambda i: (i, 0)),
        ),
        compiler_params=pltpu.CompilerParams(
            dimension_semantics=("parallel",),   # shard batch tiles across TCs (v7x)
            vmem_limit_bytes=vmem_limit,
        ),
        cost_estimate=pl.CostEstimate(
            flops=flops, transcendentals=0, bytes_accessed=bytes_accessed
        ),
    )(*args)
    return out


def init_mlp_params(key, in_features, out_features, width, depth):
    """Deterministic params matching torch.nn.Linear shapes (stored transposed)."""
    dims = [in_features] + [width] * (depth - 1) + [out_features]
    params = []
    for i in range(len(dims) - 1):
        d_in, d_out = dims[i], dims[i + 1]
        key, kw, kb = jax.random.split(key, 3)
        bound = 1.0 / jnp.sqrt(jnp.float32(d_in))
        # PyTorch weight is (d_out, d_in); we keep the transpose (d_in, d_out).
        w = jax.random.uniform(kw, (d_in, d_out), jnp.float32, -bound, bound)
        b = jax.random.uniform(kb, (d_out,), jnp.float32, -bound, bound)
        params.append((w, b))
    return params


def _ref_forward(params, x):
    h = x
    for i, (w, b) in enumerate(params):
        h = h @ w + b
        if i < len(params) - 1:
            h = jnp.maximum(h, 0.0)
    return h


if __name__ == "__main__":
    # Small shapes consistent with the module.
    batch = 16
    in_features = 16
    out_features = 8
    width = 32
    depth = 3  # input layer + 1 hidden layer + output layer

    key = jax.random.PRNGKey(0)
    key, kx = jax.random.split(key)
    x = jax.random.normal(kx, (batch, in_features), jnp.float32)
    params = init_mlp_params(key, in_features, out_features, width, depth)
    ref = _ref_forward(params, x)

    # ---- f32 path (exact vs. reference); TB=8 -> 2 grid steps on the parallel axis.
    prep_f32 = prepare_params(params, jnp.float32)
    out = jax.block_until_ready(mlp_forward(prep_f32, x))
    assert out.shape == (batch, out_features), out.shape
    assert jnp.allclose(out, ref, atol=1e-5, rtol=1e-5), float(jnp.max(jnp.abs(out - ref)))

    # ---- ragged batch (B=20, TB=16): exercises the masked last output tile
    # (no host-side batch padding or output slicing anywhere).
    x20 = jnp.concatenate([x, x[:4]], axis=0)
    ref20 = jnp.concatenate([ref, ref[:4]], axis=0)
    out20 = jax.block_until_ready(mlp_forward(prep_f32, x20))
    assert out20.shape == (20, out_features), out20.shape
    assert jnp.allclose(out20, ref20, atol=1e-5, rtol=1e-5)

    # ---- bf16 MXU-operand path (v6e/v7x): weights pre-cast once, f32 accumulation.
    prep_bf16 = prepare_params(params, jnp.bfloat16)
    out_bf = jax.block_until_ready(mlp_forward(prep_bf16, x))
    assert out_bf.shape == (batch, out_features), out_bf.shape
    assert jnp.allclose(out_bf, ref, atol=1e-1, rtol=1e-1), float(jnp.max(jnp.abs(out_bf - ref)))

    print("KERNEL_OK")
</pallas_src>

<mosaic_0001>
module attributes {stable_mosaic.version = 11 : i64} {
  func.func @_fused_mlp_kernel(%arg0: i32, %arg1: memref<8x16xf32, #tpu.memory_space<vmem>>, %arg2: memref<16x128xf32, #tpu.memory_space<vmem>>, %arg3: memref<1x128xf32, #tpu.memory_space<vmem>>, %arg4: memref<128x128xf32, #tpu.memory_space<vmem>>, %arg5: memref<1x128xf32, #tpu.memory_space<vmem>>, %arg6: memref<128x8xf32, #tpu.memory_space<vmem>>, %arg7: memref<1x8xf32, #tpu.memory_space<vmem>>, %arg8: memref<8x8xf32, #tpu.memory_space<vmem>>) attributes {dimension_semantics = [#tpu.dimension_semantics<parallel>], iteration_bounds = array<i64: 2>, scalar_prefetch = 0 : i64, scratch_operands = 0 : i64, tpu.core_type = #tpu.core_type<tc>, window_params = [{transform_indices = @transform_0, window_bounds = array<i64: 8, 16>}, {pipeline_mode = #tpu.pipeline_mode<synchronous>, transform_indices = @transform_1, window_bounds = array<i64: 16, 128>}, {pipeline_mode = #tpu.pipeline_mode<synchronous>, transform_indices = @transform_2, window_bounds = array<i64: 1, 128>}, {pipeline_mode = #tpu.pipeline_mode<synchronous>, transform_indices = @transform_3, window_bounds = array<i64: 128, 128>}, {pipeline_mode = #tpu.pipeline_mode<synchronous>, transform_indices = @transform_4, window_bounds = array<i64: 1, 128>}, {pipeline_mode = #tpu.pipeline_mode<synchronous>, transform_indices = @transform_5, window_bounds = array<i64: 128, 8>}, {pipeline_mode = #tpu.pipeline_mode<synchronous>, transform_indices = @transform_6, window_bounds = array<i64: 1, 8>}, {transform_indices = @transform_7, window_bounds = array<i64: 8, 8>}]} {
    %c0 = arith.constant 0 : index
    %c0_0 = arith.constant 0 : index
    %0 = vector.load %arg1[%c0, %c0_0] : memref<8x16xf32, #tpu.memory_space<vmem>>, vector<8x16xf32>
    %c0_1 = arith.constant 0 : index
    %c0_2 = arith.constant 0 : index
    %1 = vector.load %arg2[%c0_1, %c0_2] : memref<16x128xf32, #tpu.memory_space<vmem>>, vector<16x128xf32>
    %cst = arith.constant dense<0.000000e+00> : vector<8x128xf32>
    %2 = tpu.matmul %0, %1, %cst {dimension_numbers = #tpu.dot_dimension_numbers<[1], [0], [0], [1], [0, 0, 1, 1], [], []>} : vector<8x16xf32>, vector<16x128xf32>, vector<8x128xf32> -> vector<8x128xf32>
    %c0_3 = arith.constant 0 : index
    %c0_4 = arith.constant 0 : index
    %3 = vector.load %arg3[%c0_3, %c0_4] : memref<1x128xf32, #tpu.memory_space<vmem>>, vector<1x128xf32>
    %4 = vector.broadcast %3 : vector<1x128xf32> to vector<8x128xf32>
    %5 = arith.addf %2, %4 : vector<8x128xf32>
    %cst_5 = arith.constant 0.000000e+00 : f32
    %6 = vector.broadcast %cst_5 : f32 to vector<8x128xf32>
    %7 = arith.maximumf %5, %6 : vector<8x128xf32>
    %c0_6 = arith.constant 0 : index
    %c0_7 = arith.constant 0 : index
    %8 = vector.load %arg4[%c0_6, %c0_7] : memref<128x128xf32, #tpu.memory_space<vmem>>, vector<128x128xf32>
    %cst_8 = arith.constant dense<0.000000e+00> : vector<8x128xf32>
    %9 = tpu.matmul %7, %8, %cst_8 {dimension_numbers = #tpu.dot_dimension_numbers<[1], [0], [0], [1], [0, 0, 1, 1], [], []>} : vector<8x128xf32>, vector<128x128xf32>, vector<8x128xf32> -> vector<8x128xf32>
    %c0_9 = arith.constant 0 : index
    %c0_10 = arith.constant 0 : index
    %10 = vector.load %arg5[%c0_9, %c0_10] : memref<1x128xf32, #tpu.memory_space<vmem>>, vector<1x128xf32>
    %11 = vector.broadcast %10 : vector<1x128xf32> to vector<8x128xf32>
    %12 = arith.addf %9, %11 : vector<8x128xf32>
    %cst_11 = arith.constant 0.000000e+00 : f32
    %13 = vector.broadcast %cst_11 : f32 to vector<8x128xf32>
    %14 = arith.maximumf %12, %13 : vector<8x128xf32>
    %c0_12 = arith.constant 0 : index
    %c0_13 = arith.constant 0 : index
    %15 = vector.load %arg6[%c0_12, %c0_13] : memref<128x8xf32, #tpu.memory_space<vmem>>, vector<128x8xf32>
    %cst_14 = arith.constant dense<0.000000e+00> : vector<8x8xf32>
    %16 = tpu.matmul %14, %15, %cst_14 {dimension_numbers = #tpu.dot_dimension_numbers<[1], [0], [0], [1], [0, 0, 1, 1], [], []>} : vector<8x128xf32>, vector<128x8xf32>, vector<8x8xf32> -> vector<8x8xf32>
    %c0_15 = arith.constant 0 : index
    %c0_16 = arith.constant 0 : index
    %17 = vector.load %arg7[%c0_15, %c0_16] : memref<1x8xf32, #tpu.memory_space<vmem>>, vector<1x8xf32>
    %18 = vector.broadcast %17 : vector<1x8xf32> to vector<8x8xf32>
    %19 = arith.addf %16, %18 : vector<8x8xf32>
    %c0_17 = arith.constant 0 : index
    %c0_18 = arith.constant 0 : index
    %20 = vector.load %arg8[%c0_17, %c0_18] : memref<8x8xf32, #tpu.memory_space<vmem>>, vector<8x8xf32>
    tpu.vector_store %arg8[%c0_17, %c0_18], %19 {strides = array<i32>} : memref<8x8xf32, #tpu.memory_space<vmem>>, vector<8x8xf32>,
    return
  }
  func.func @transform_0(%arg0: i32) -> (i32, i32) {
    %c0_i32 = arith.constant 0 : i32
    %c0_i32_0 = arith.constant 0 : i32
    return %arg0, %c0_i32 : i32, i32
  }
  func.func @transform_1(%arg0: i32) -> (i32, i32) {
    %c0_i32 = arith.constant 0 : i32
    %c0_i32_0 = arith.constant 0 : i32
    %c0_i32_1 = arith.constant 0 : i32
    return %c0_i32, %c0_i32_0 : i32, i32
  }
  func.func @transform_2(%arg0: i32) -> (i32, i32) {
    %c0_i32 = arith.constant 0 : i32
    %c0_i32_0 = arith.constant 0 : i32
    %c0_i32_1 = arith.constant 0 : i32
    return %c0_i32, %c0_i32_0 : i32, i32
  }
  func.func @transform_3(%arg0: i32) -> (i32, i32) {
    %c0_i32 = arith.constant 0 : i32
    %c0_i32_0 = arith.constant 0 : i32
    %c0_i32_1 = arith.constant 0 : i32
    return %c0_i32, %c0_i32_0 : i32, i32
  }
  func.func @transform_4(%arg0: i32) -> (i32, i32) {
    %c0_i32 = arith.constant 0 : i32
    %c0_i32_0 = arith.constant 0 : i32
    %c0_i32_1 = arith.constant 0 : i32
    return %c0_i32, %c0_i32_0 : i32, i32
  }
  func.func @transform_5(%arg0: i32) -> (i32, i32) {
    %c0_i32 = arith.constant 0 : i32
    %c0_i32_0 = arith.constant 0 : i32
    %c0_i32_1 = arith.constant 0 : i32
    return %c0_i32, %c0_i32_0 : i32, i32
  }
  func.func @transform_6(%arg0: i32) -> (i32, i32) {
    %c0_i32 = arith.constant 0 : i32
    %c0_i32_0 = arith.constant 0 : i32
    %c0_i32_1 = arith.constant 0 : i32
    return %c0_i32, %c0_i32_0 : i32, i32
  }
  func.func @transform_7(%arg0: i32) -> (i32, i32) {
    %c0_i32 = arith.constant 0 : i32
    %c0_i32_0 = arith.constant 0 : i32
    return %arg0, %c0_i32 : i32, i32
  }
}

</mosaic_0001>

<bundles_post_ra>
// kernel: tpu_custom_call.1
= control target key start
LH: loop header
LB: loop body
LE: loop exit
PB: predicated region body
PF: predicated region fallthrough
CT: control target
= control target key end

     0   :  { %12 = vsyncpa [#allocation3], 0  ;;  %s918_s24 = smov 0   ;;  %s1106_s0 = inlined_call_operand.vmem [shape: f32[16,16], index: 0, kind: input, shape index: {}]   ;;  %s1107_s1 = inlined_call_operand.hbm [shape: f32[16,128], index: 1, kind: input, shape index: {}]   ;;  %s1108_s2 = inlined_call_operand.vmem [shape: f32[1,128], index: 2, kind: input, shape index: {}]   ;;  %s1109_s3 = inlined_call_operand.vmem [shape: f32[128,128], index: 3, kind: input, shape index: {}]   ;;  %s1110_s4 = inlined_call_operand.vmem [shape: f32[1,128], index: 4, kind: input, shape index: {}]   ;;  %s1111_s5 = inlined_call_operand.vmem [shape: f32[128,8], index: 5, kind: input, shape index: {}]   ;;  %s1112_s6 = inlined_call_operand.vmem [shape: f32[1,8], index: 6, kind: input, shape index: {}]   ;;  %s1113_s7 = inlined_call_operand.vmem [shape: f32[16,8], index: 7, kind: output, shape index: {}]  }
   0x1 LB: > { %s924_s25 = sadd.s32 4294967295, %s870_s24   ;;  %p630_p0 = scmp.ge.s32.totalorder %s870_s24, 1  ;;  %s870_s24 = sphi %s918_s24, %s18_s24  }
   0x2   : > { %p201_p1 = scmp.lt.s32.totalorder %s870_s24, 3  ;;  %s872_s26 = smov [#allocation2]  }
   0x3   : > { %s213_s27 = sshll.u32 %s872_s26, 4  ;;  %p1114_p3 = scmp.eq.s32.totalorder %s924_s25, 0  ;;  %s214_s27 = int_to_ptr.vmem [resolvable:$true] %s213_s27 }
   0x4   : > { %p928_p2 = pnand %p630_p0, %p201_p1  ;;  %s832_s9 = scalar_lea.hbm %s1107_s1, 256 }
   0x5   : > { %p833_p6 = scmp.ne.s32.totalorder %s1107_s1, %s832_s9  ;;  %p839_p10 = scmp.lt.u32.totalorder %s832_s9, %s1107_s1 }
   0x6   : > { %s1116_s28 = scalar_select %p928_p2, 1, 0 }
   0x7   : > { %p812_p4 = pneg %p928_p2 }
   0x9   : > { %p937_p5 = pnand %p1114_p3, %p812_p4 }
   0xb   : > { %p834_p7 = pneg %p937_p5 }
   0xd   : > { %p835_p8 = pnand %p834_p7, %p833_p6 }
   0xf   : > { %p836_p9 = pneg %p835_p8 }
  0x11   : > { %p841_p11 = pnand %p839_p10, %p836_p9 }
  0x13   : > { %844 = shalt.err (!%p841_p11)
}
  0x14   : > { %s845_s14 = scalar_lea.vmem %s214_s27, 256  ;;  %p853_p1 = scmp.lt.s32.totalorder %s214_s27, %s214_s27 }
  0x15   : > { %p846_p12 = scmp.ne.s32.totalorder %s214_s27, %s845_s14  ;;  %p854_p4 = scmp.lt.s32.totalorder %s845_s14, %s845_s14 }
  0x17   : > { %p848_p13 = pnand %p846_p12, %p834_p7  ;;  %p855_p3 = por %p854_p4, %p853_p1 }
  0x19   : > { %p849_p0 = pneg %p848_p13 }
  0x1b   : > { %p856_p2 = pnand %p855_p3, %p849_p0 }
  0x1d   : > { %859 = shalt.err (!%p856_p2)
}
  0x1e   : > { %s873_s15 = smov 128   ;;  %s874_s16 = smov 8  }
  0x1f   : > { %815 = dma.hbm_to_vmem [thread:$0]  (!%p937_p5), %s1107_s1, 256, %s214_s27, [#allocation3], %s873_s15, %s873_s15, %s874_s16  }
  0x20   : > { %p1118_p6 = scmp.ne.s32.totalorder %s1116_s28, 0 }
  0x21   : > { %p1119_p8 = scmp.eq.s32.totalorder (!%p1118_p6), %s924_s25, 0 }
  0x22   : > { %251 = sbr.rel (%p1118_p6) target bundleno = 695 (0x2b7), region = 48 }
  0x29   : > { %865 = dma.done.wait (%p1119_p8), [#allocation3], 256   ;;  %p1120_p7 = pmov %p1119_p8 }
  0x2a   : > { %p281_p2 = scmp.lt.s32.totalorder %s924_s25, 1  ;;  %v875_v0 = vmov 0.0|0.0   ;;  %vm876_vm0 = vmmov 0   ;;  %v877_v1 = vmov 0.0   ;;  %v290_v2 = vld [vmem:[#allocation2] sm:$0xff]  ;;  %v291_v3 = vld [vmem:[#allocation2 + $0x8] sm:$0xff] }
  0x2b   : > { %867 = vsyncadd (%p1120_p7), [#allocation3], 4294967040  ;;  %757 = vmatprep.subr.bf16.mxu0 %v875_v0  ;;  %684 = vmatprep.mubr.msk.f32.mxu0 %vm876_vm0, %v877_v1  ;;  %v758_v4 = vpack.c.bf16 %v291_v3, %v290_v2  ;;  %v374_v5 = vld [vmem:[%s1109_s3] sm:$0xff]  ;;  %v375_v6 = vld [vmem:[%s1109_s3 + $0x8] sm:$0xff]  ;;  %vm299_vm1 = vcmask 130048   ;;  %vm561_vm2 = vcmask 64512  }
  0x2c   : > { %s1122_s25 = smov (!%p281_p2, %s924_s25), 1  ;;  %760 = vmatprep.subr.bf16.mxu1 %v875_v0  ;;  %719 = vmatprep.mubr.msk.f32.mxu1 %vm876_vm0, %v877_v1  ;;  %v376_v7 = vld [vmem:[%s1109_s3 + $0x10] sm:$0xff]  ;;  %v761_v8 = vpack.c.bf16 %v375_v6, %v374_v5  ;;  %v377_v9 = vld [vmem:[%s1109_s3 + $0x18] sm:$0xff]  ;;  %v378_v12 = vld [vmem:[%s1109_s3 + $0x20] sm:$0xff] }
  0x2d   : > { %s635_s19 = sshll.u32 %s1122_s25, 3  ;;  %759 = vmatpush3.bf16.msra.mxu0 %v758_v4  ;;  %v764_v11 = vpack.c.bf16 %v377_v9, %v376_v7  ;;  %v379_v13 = vld [vmem:[%s1109_s3 + $0x28] sm:$0xff]  ;;  %v380_v15 = vld [vmem:[%s1109_s3 + $0x30] sm:$0xff]  ;;  %v381_v16 = vld [vmem:[%s1109_s3 + $0x38] sm:$0xff] }
  0x2e   : > { %s284_s22 = scalar_lea.vmem %s1106_s0, %s635_s19  ;;  %762 = vmatpush3.bf16.msra.mxu1 %v761_v8  ;;  %784 = vmatprep.subr.bf16.mxu0 %v875_v0  ;;  %v767_v14 = vpack.c.bf16 %v379_v13, %v378_v12  ;;  %v770_v17 = vpack.c.bf16 %v381_v16, %v380_v15  ;;  %v382_v18 = vld [vmem:[%s1109_s3 + $0x40] sm:$0xff]  ;;  %v383_v19 = vld [vmem:[%s1109_s3 + $0x48] sm:$0xff]  ;;  %v384_v21 = vld [vmem:[%s1109_s3 + $0x50] sm:$0xff]  ;;  %s288_s14 = scalar_lea.vmem %s1113_s7, %s635_s19 }
  0x2f   : > { %v289_v10 = vld [vmem:[%s284_s22] sm:$0xff]  ;;  %763 = vmatprep.subr.bf16.mxu1 %v875_v0  ;;  %v773_v20 = vpack.c.bf16 %v383_v19, %v382_v18  ;;  %v385_v22 = vld [vmem:[%s1109_s3 + $0x58] sm:$0xff]  ;;  %v387_v25 = vld [vmem:[%s1109_s3 + $0x68] sm:$0xff] }
  0x30   : > { %685 = vmatmul.mubr.msk.f32.vlgmr.msra.gmra.mrb[0].mxu0 %vm299_vm1, %v289_v10  ;;  %v776_v23 = vpack.c.bf16 %v385_v22, %v384_v21  ;;  %v386_v24 = vld [vmem:[%s1109_s3 + $0x60] sm:$0xff]  ;;  %v388_v27 = vld [vmem:[%s1109_s3 + $0x70] sm:$0xff]  ;;  %v389_v28 = vld [vmem:[%s1109_s3 + $0x78] sm:$0xff] }
  0x31   : > { %754 = vmatprep.mubr.msk.f32.mxu0 %vm876_vm0, %v877_v1  ;;  %v779_v26 = vpack.c.bf16 %v387_v25, %v386_v24  ;;  %v782_v29 = vpack.c.bf16 %v389_v28, %v388_v27  ;;  %v468_v30 = vld [vmem:[%s1111_s5] sm:$0xff]  ;;  %v469_v31 = vld [vmem:[%s1111_s5 + $0x8] sm:$0xff]  ;;  %v470_v32 = vld [vmem:[%s1111_s5 + $0x10] sm:$0xff] }
  0x32   : > { %765 = vmatpush3.bf16.msra.mxu1 %v764_v11  ;;  %v785_v33 = vpack.c.bf16 %v469_v31, %v468_v30  ;;  %v471_v34 = vld [vmem:[%s1111_s5 + $0x18] sm:$0xff]  ;;  %v472_v36 = vld [vmem:[%s1111_s5 + $0x20] sm:$0xff]  ;;  %v473_v37 = vld [vmem:[%s1111_s5 + $0x28] sm:$0xff] }
  0x33   : > { %766 = vmatprep.subr.bf16.mxu1 %v875_v0  ;;  %v788_v35 = vpack.c.bf16 %v471_v34, %v470_v32  ;;  %v791_v38 = vpack.c.bf16 %v473_v37, %v472_v36  ;;  %v474_v39 = vld [vmem:[%s1111_s5 + $0x30] sm:$0xff]  ;;  %v475_v40 = vld [vmem:[%s1111_s5 + $0x38] sm:$0xff]  ;;  %v476_v42 = vld [vmem:[%s1111_s5 + $0x40] sm:$0xff] }
  0x34   : > { %786 = vmatpush3.bf16.msra.mxu0 %v785_v33  ;;  %v794_v41 = vpack.c.bf16 %v475_v40, %v474_v39  ;;  %v477_v43 = vld [vmem:[%s1111_s5 + $0x48] sm:$0xff]  ;;  %v478_v45 = vld [vmem:[%s1111_s5 + $0x50] sm:$0xff]  ;;  %v479_v46 = vld [vmem:[%s1111_s5 + $0x58] sm:$0xff] }
  0x35   : > { %787 = vmatprep.subr.bf16.mxu0 %v875_v0  ;;  %v797_v44 = vpack.c.bf16 %v477_v43, %v476_v42  ;;  %v800_v47 = vpack.c.bf16 %v479_v46, %v478_v45  ;;  %v480_v48 = vld [vmem:[%s1111_s5 + $0x60] sm:$0xff]  ;;  %v481_v49 = vld [vmem:[%s1111_s5 + $0x68] sm:$0xff]  ;;  %v482_v56 = vld [vmem:[%s1111_s5 + $0x70] sm:$0xff] }
  0x36   : > { %768 = vmatpush3.bf16.msra.mxu1 %v767_v14  ;;  %v803_v50 = vpack.c.bf16 %v481_v49, %v480_v48  ;;  %v637_v51 = vld [vmem:[%s1108_s2] ss:$0 sm:$0xff]  ;;  %v483_v57 = vld [vmem:[%s1111_s5 + $0x78] sm:$0xff] }
  0x37   : > { %769 = vmatprep.subr.bf16.mxu1 %v875_v0  ;;  %v806_v58 = vpack.c.bf16 %v483_v57, %v482_v56  ;;  %v639_v59 = vld [vmem:[%s1110_s4] ss:$0 sm:$0xff] }
  0x38   : > { %789 = vmatpush3.bf16.msra.mxu0 %v788_v35 }
  0x39   : > { %790 = vmatprep.subr.bf16.mxu0 %v875_v0 }
  0x3a   : > { %771 = vmatpush3.bf16.msra.mxu1 %v770_v17 }
  0x3b   : > { %772 = vmatprep.subr.bf16.mxu1 %v875_v0 }
  0x3c   : > { %792 = vmatpush3.bf16.msra.mxu0 %v791_v38 }
  0x3d   : > { %793 = vmatprep.subr.bf16.mxu0 %v875_v0 }
  0x3e   : > { %774 = vmatpush3.bf16.msra.mxu1 %v773_v20 }
  0x3f   : > { %775 = vmatprep.subr.bf16.mxu1 %v875_v0 }
  0x40   : > { %795 = vmatpush3.bf16.msra.mxu0 %v794_v41 }
  0x41   : > { %796 = vmatprep.subr.bf16.mxu0 %v875_v0 }
  0x42   : > { %777 = vmatpush3.bf16.msra.mxu1 %v776_v23 }
  0x43   : > { %778 = vmatprep.subr.bf16.mxu1 %v875_v0 }
  0x44   : > { %798 = vmatpush3.bf16.msra.mxu0 %v797_v44 }
  0x45   : > { %799 = vmatprep.subr.bf16.mxu0 %v875_v0 }
  0x46   : > { %780 = vmatpush3.bf16.msra.mxu1 %v779_v26 }
  0x47   : > { %781 = vmatprep.subr.bf16.mxu1 %v875_v0 }
  0x48   : > { %801 = vmatpush3.bf16.msra.mxu0 %v800_v47 }
  0x49   : > { %802 = vmatprep.subr.bf16.mxu0 %v875_v0 }
  0x4a   : > { %783 = vmatpush3.bf16.msra.mxu1 %v782_v29 }
  0x4c   : > { %804 = vmatpush3.bf16.msra.mxu0 %v803_v50 }
  0x4d   : > { %805 = vmatprep.subr.bf16.mxu0 %v875_v0  ;;  %v640_v0 = vld [vmem:[%s1112_s6] ss:$0 sm:$0xff] }
  0x50   : > { %807 = vmatpush3.bf16.msra.mxu0 %v806_v58 }
 0x103   : > { %v369_v52 = vpop.f32.mrb[0].mxu0 }
 0x104   : > { %v370_v53 = vadd.f32 %v637_v51, %v369_v52  ;;  %v686_v54 = vpop.f32.mrb[1].mxu0 }
 0x106   : > { %v373_v55 = vmax.f32 %v370_v53, 0.0 }
 0x108   : > { %720 = vmatmul.mubr.f32.vlgmr.msra.gmra.mrb[0].mxu1 %v373_v55 }
 0x1db   : > { %v463_v60 = vpop.f32.mrb[0].mxu1 }
 0x1dc   : > { %v464_v61 = vadd.f32 %v639_v59, %v463_v60  ;;  %v721_v62 = vpop.f32.mrb[1].mxu1 }
 0x1de   : > { %v467_v63 = vmax.f32 %v464_v61, 0.0 }
 0x1e0   : > { %755 = vmatmul.mubr.f32.vlgmr.msra.gmra.mrb[2].mxu0 %v467_v63 }
 0x2b3   : > { %v557_v1 = vpop.f32.mrb[2].mxu0 }
 0x2b4   : > { %v558_v2 = vadd.f32 %v640_v0, %v557_v1  ;;  %v756_v3 = vpop.f32.mrb[3].mxu0 }
 0x2b6   : > { %562 = vst.msk [vmem:[%s288_s14] sm:$0xff] %vm561_vm2, %v558_v2 }
 0x2b7 PF: > { %s18_s24 = sadd.s32 1, %s870_s24  }
 0x2b8   : > { %p15_p3 = scmp.ge.s32.totalorder %s18_s24, 4  }
 0x2ba   :  { %17 = sbr.rel (!%p15_p3) target bundleno = 1 (0x1), region = 83 }
 0x2c1   :  { %582 = vsyncpa [#allocation3], 1 }
 0x2c2   :  { %584 = vsyncpa [#allocation3 + $0x1], 1 }

</bundles_post_ra>
